<compile_context>
chip_gen: v7x
topology: tpu7x:2x2x1
jax: 0.10.0
libtpu: 0.0.40
codegen_flags: <defaults>
</compile_context>

<pallas_src>
import math

import jax
import jax.numpy as jnp
from jax.experimental import pallas as pl
from jax.experimental.pallas import tpu as pltpu


def _round_up(x, m):
    return ((x + m - 1) // m) * m


# ---------------------------------------------------------------------------
# Kernel body
# ---------------------------------------------------------------------------
def mf_linear_kernel(x_ref, x2_ref, wm_ref, wve_ref, bm_ref, bve_ref,
                     eps_ref, o_ref):
    """One (tm, tn) output tile of the mean-field linear reparameterization."""
    # Mean path: bf16 inputs on the MXU, f32 accumulation.
    mean = (
        jnp.dot(x_ref[...], wm_ref[...], preferred_element_type=jnp.float32)
        + bm_ref[...]
    )
    # Variance path: bf16 inputs (all-positive reduction), f32 accumulation.
    var = (
        jnp.dot(x2_ref[...], wve_ref[...], preferred_element_type=jnp.float32)
        + bve_ref[...]
    )
    o_ref[...] = (mean + eps_ref[...] * jnp.sqrt(var)).astype(o_ref.dtype)


# ---------------------------------------------------------------------------
# Parameter preparation (cacheable across forward calls)
# ---------------------------------------------------------------------------
def prepare_mf_linear_params(W_mean, W_var, b_mean, b_var, *,
                             mean_dtype=jnp.bfloat16,
                             var_dtype=jnp.bfloat16):
    """Hoist transpose + exp() out of the per-call path; cache if weights are
    static between optimizer steps."""
    N = W_mean.shape[0]
    wm_t = W_mean.T.astype(mean_dtype)                                # (K, N)
    wve_t = jnp.exp(W_var.astype(jnp.float32)).T.astype(var_dtype)    # (K, N)
    bm = b_mean.reshape(1, N).astype(jnp.float32)
    bve = jnp.exp(b_var.astype(jnp.float32)).reshape(1, N)
    return wm_t, wve_t, bm, bve


# ---------------------------------------------------------------------------
# Wrapper
# ---------------------------------------------------------------------------
def mf_linear_forward(x, W_mean, W_var, b_mean, b_var, *,
                      eps=None, seed=0,
                      prepared=None,
                      tm=256, tn=256,
                      mean_dtype=jnp.bfloat16,
                      var_dtype=jnp.bfloat16,
                      out_dtype=jnp.float32):
    """x: [S, B, dim_in]; W_*: [dim_out, dim_in]; b_*: [dim_out].

    eps: optional [S, B, dim_out] standard-normal noise.  If None, noise is
         generated host-side with jax.random (seeded by `seed`).
    prepared: optional output of prepare_mf_linear_params() to avoid
         re-materializing exp()/transpose of the weights every call.
    """
    S, B, K = x.shape
    N = W_mean.shape[0]
    M = S * B

    if prepared is None:
        prepared = prepare_mf_linear_params(
            W_mean, W_var, b_mean, b_var,
            mean_dtype=mean_dtype, var_dtype=var_dtype)
    wm_t, wve_t, bm, bve = prepared

    if eps is None:
        eps = jax.random.normal(jax.random.PRNGKey(seed), (S, B, N), jnp.float32)

    # ---- tile sizes + padding (no divisibility requirements on M, N) --------
    tm_eff = min(tm, _round_up(M, 16))          # 16: bf16 sublane packing
    Mp = _round_up(M, tm_eff)
    Np0 = _round_up(N, 128)
    tn_eff = Np0 if Np0 <= tn else tn
    assert tn_eff % 128 == 0, "tn must be a multiple of 128"
    Np = _round_up(Np0, tn_eff)

    x_f32 = x.reshape(M, K).astype(jnp.float32)
    x_md = jnp.pad(x_f32.astype(mean_dtype), ((0, Mp - M), (0, 0)))
    x2_vd = jnp.pad((x_f32 * x_f32).astype(var_dtype), ((0, Mp - M), (0, 0)))
    wm_p = jnp.pad(wm_t, ((0, 0), (0, Np - N)))
    wve_p = jnp.pad(wve_t, ((0, 0), (0, Np - N)))
    bm_p = jnp.pad(bm, ((0, 0), (0, Np - N)))
    bve_p = jnp.pad(bve, ((0, 0), (0, Np - N)))
    eps_p = jnp.pad(eps.reshape(M, N).astype(jnp.float32),
                    ((0, Mp - M), (0, Np - N)))

    # ---- grid: N-tile index j is slow (outer), M-tile index i is fast --------
    # Weight tiles (indexed by j only) stay resident across the inner M sweep.
    grid = (Np // tn_eff, Mp // tm_eff)

    x_spec = pl.BlockSpec((tm_eff, K), lambda j, i: (i, 0))
    w_spec = pl.BlockSpec((K, tn_eff), lambda j, i: (0, j))
    b_spec = pl.BlockSpec((1, tn_eff), lambda j, i: (0, j))
    io_spec = pl.BlockSpec((tm_eff, tn_eff), lambda j, i: (i, j))

    # ---- explicit VMEM budget (double-buffered tiles), clamped for v7x ------
    xb = jnp.dtype(mean_dtype).itemsize
    x2b = jnp.dtype(var_dtype).itemsize
    ob = jnp.dtype(out_dtype).itemsize
    est = 2 * (tm_eff * K * (xb + x2b)
               + K * tn_eff * (xb + x2b)
               + 2 * tn_eff * 4
               + tm_eff * tn_eff * (4 + ob))
    vmem_limit = int(min(max(est + (4 << 20), 16 << 20), 56 << 20))

    out2d = pl.pallas_call(
        mf_linear_kernel,
        out_shape=jax.ShapeDtypeStruct((Mp, Np), out_dtype),
        grid_spec=pltpu.PrefetchScalarGridSpec(
            num_scalar_prefetch=0,
            grid=grid,
            in_specs=[x_spec, x_spec, w_spec, w_spec, b_spec, b_spec, io_spec],
            out_specs=io_spec,
        ),
        compiler_params=pltpu.CompilerParams(
            dimension_semantics=("parallel", "parallel"),
            vmem_limit_bytes=vmem_limit,
        ),
    )(x_md, x2_vd, wm_p, wve_p, bm_p, bve_p, eps_p)

    return out2d[:M, :N].reshape(S, B, N)


# ---------------------------------------------------------------------------
# Parameter init (deterministic re-implementation of reset_parameters())
# ---------------------------------------------------------------------------
def init_params(key, dim_in, dim_out, init_var=-7):
    k_w, k_b = jax.random.split(key)
    bound = 1.0 / math.sqrt(dim_in)     # kaiming_uniform_(a=sqrt(5)) bound
    W_mean = jax.random.uniform(k_w, (dim_out, dim_in), jnp.float32,
                                minval=-bound, maxval=bound)
    b_mean = jax.random.uniform(k_b, (dim_out,), jnp.float32,
                                minval=-bound, maxval=bound)
    W_var = jnp.full((dim_out, dim_in), float(init_var), jnp.float32)
    b_var = jnp.full((dim_out,), float(init_var), jnp.float32)
    return W_mean, b_mean, W_var, b_var


if __name__ == "__main__":
    key = jax.random.PRNGKey(0)
    k_param, k_x, k_eps = jax.random.split(key, 3)

    # Small shapes chosen to exercise M-padding (S*B=14 -> 16) and N-padding /
    # N-tiling (300 -> 384 or 512 depending on tn).
    S, B, dim_in, dim_out = 2, 7, 32, 300
    W_mean, b_mean, W_var, b_var = init_params(k_param, dim_in, dim_out)

    x = jax.random.normal(k_x, (S, B, dim_in), jnp.float32)
    eps = jax.random.normal(k_eps, (S, B, dim_out), jnp.float32)

    # ---- references ---------------------------------------------------------
    # Full-f32 module semantics.
    ref_mean_f32 = x @ W_mean.T + b_mean[None, None, :]
    ref_std_f32 = jnp.sqrt((x ** 2) @ jnp.exp(W_var.T)
                           + jnp.exp(b_var)[None, None, :])
    ref_f32 = ref_mean_f32 + eps * ref_std_f32

    # Precision-matched reference (bf16 matmul inputs, f32 accumulation).
    wm_bf = W_mean.T.astype(jnp.bfloat16)
    wve_bf = jnp.exp(W_var.astype(jnp.float32)).T.astype(jnp.bfloat16)
    mean_m = (jnp.dot(x.astype(jnp.bfloat16), wm_bf,
                      preferred_element_type=jnp.float32)
              + b_mean[None, None, :])
    var_m = (jnp.dot((x * x).astype(jnp.bfloat16), wve_bf,
                     preferred_element_type=jnp.float32)
             + jnp.exp(b_var)[None, None, :])
    ref_matched = mean_m + eps * jnp.sqrt(var_m)

    # ---- 1) external eps, default (large) tiles -----------------------------
    out = mf_linear_forward(x, W_mean, W_var, b_mean, b_var, eps=eps)
    out = jax.block_until_ready(out)
    assert out.shape == (S, B, dim_out)
    assert jnp.allclose(out, ref_matched, atol=5e-3, rtol=5e-3), \
        "mismatch vs precision-matched reference"
    assert jnp.allclose(out, ref_f32, atol=5e-2, rtol=5e-2), \
        "mismatch vs f32 reference (bf16 drift too large)"

    # ---- 2) external eps, small tiles (multi-tile N grid + padding) ---------
    out_small = mf_linear_forward(x, W_mean, W_var, b_mean, b_var,
                                  eps=eps, tm=16, tn=128)
    out_small = jax.block_until_ready(out_small)
    assert jnp.allclose(out_small, ref_matched, atol=5e-3, rtol=5e-3), \
        "mismatch vs reference with multi-tile grid"

    # ---- 3) cached prepared weights + wrapper-generated noise ---------------
    prepped = prepare_mf_linear_params(W_mean, W_var, b_mean, b_var)
    out_rng = mf_linear_forward(x, W_mean, W_var, b_mean, b_var,
                                eps=None, seed=42, prepared=prepped)
    out_rng = jax.block_until_ready(out_rng)
    assert out_rng.shape == (S, B, dim_out)
    assert bool(jnp.all(jnp.isfinite(out_rng)))
    z = (out_rng - ref_mean_f32) / ref_std_f32   # should look ~ N(0, 1)
    assert abs(float(z.mean())) < 0.2, "generated noise grossly biased"
    assert 0.7 < float(z.std()) < 1.4, "generated noise scale is wrong"

    print("KERNEL_OK")
</pallas_src>

<mosaic_0001>
module attributes {stable_mosaic.version = 11 : i64} {
  func.func @mf_linear_kernel(%arg0: i32, %arg1: i32, %arg2: memref<16x32xbf16, #tpu.memory_space<vmem>>, %arg3: memref<16x32xbf16, #tpu.memory_space<vmem>>, %arg4: memref<32x256xbf16, #tpu.memory_space<vmem>>, %arg5: memref<32x256xbf16, #tpu.memory_space<vmem>>, %arg6: memref<1x256xf32, #tpu.memory_space<vmem>>, %arg7: memref<1x256xf32, #tpu.memory_space<vmem>>, %arg8: memref<16x256xf32, #tpu.memory_space<vmem>>, %arg9: memref<16x256xf32, #tpu.memory_space<vmem>>) attributes {dimension_semantics = [#tpu.dimension_semantics<parallel>, #tpu.dimension_semantics<parallel>], iteration_bounds = array<i64: 2, 1>, scalar_prefetch = 0 : i64, scratch_operands = 0 : i64, tpu.core_type = #tpu.core_type<tc>, window_params = [{transform_indices = @transform_0, window_bounds = array<i64: 16, 32>}, {transform_indices = @transform_1, window_bounds = array<i64: 16, 32>}, {transform_indices = @transform_2, window_bounds = array<i64: 32, 256>}, {transform_indices = @transform_3, window_bounds = array<i64: 32, 256>}, {transform_indices = @transform_4, window_bounds = array<i64: 1, 256>}, {transform_indices = @transform_5, window_bounds = array<i64: 1, 256>}, {transform_indices = @transform_6, window_bounds = array<i64: 16, 256>}, {transform_indices = @transform_7, window_bounds = array<i64: 16, 256>}]} {
    %c0 = arith.constant 0 : index
    %c0_0 = arith.constant 0 : index
    %0 = vector.load %arg2[%c0, %c0_0] : memref<16x32xbf16, #tpu.memory_space<vmem>>, vector<16x32xbf16>
    %c0_1 = arith.constant 0 : index
    %c0_2 = arith.constant 0 : index
    %1 = vector.load %arg4[%c0_1, %c0_2] : memref<32x256xbf16, #tpu.memory_space<vmem>>, vector<32x256xbf16>
    %cst = arith.constant dense<0.000000e+00> : vector<16x256xf32>
    %2 = tpu.matmul %0, %1, %cst {dimension_numbers = #tpu.dot_dimension_numbers<[1], [0], [0], [1], [0, 0, 1, 1], [], []>} : vector<16x32xbf16>, vector<32x256xbf16>, vector<16x256xf32> -> vector<16x256xf32>
    %c0_3 = arith.constant 0 : index
    %c0_4 = arith.constant 0 : index
    %3 = vector.load %arg6[%c0_3, %c0_4] : memref<1x256xf32, #tpu.memory_space<vmem>>, vector<1x256xf32>
    %4 = vector.broadcast %3 : vector<1x256xf32> to vector<16x256xf32>
    %5 = arith.addf %2, %4 : vector<16x256xf32>
    %c0_5 = arith.constant 0 : index
    %c0_6 = arith.constant 0 : index
    %6 = vector.load %arg3[%c0_5, %c0_6] : memref<16x32xbf16, #tpu.memory_space<vmem>>, vector<16x32xbf16>
    %c0_7 = arith.constant 0 : index
    %c0_8 = arith.constant 0 : index
    %7 = vector.load %arg5[%c0_7, %c0_8] : memref<32x256xbf16, #tpu.memory_space<vmem>>, vector<32x256xbf16>
    %cst_9 = arith.constant dense<0.000000e+00> : vector<16x256xf32>
    %8 = tpu.matmul %6, %7, %cst_9 {dimension_numbers = #tpu.dot_dimension_numbers<[1], [0], [0], [1], [0, 0, 1, 1], [], []>} : vector<16x32xbf16>, vector<32x256xbf16>, vector<16x256xf32> -> vector<16x256xf32>
    %c0_10 = arith.constant 0 : index
    %c0_11 = arith.constant 0 : index
    %9 = vector.load %arg7[%c0_10, %c0_11] : memref<1x256xf32, #tpu.memory_space<vmem>>, vector<1x256xf32>
    %10 = vector.broadcast %9 : vector<1x256xf32> to vector<16x256xf32>
    %11 = arith.addf %8, %10 : vector<16x256xf32>
    %c0_12 = arith.constant 0 : index
    %c0_13 = arith.constant 0 : index
    %12 = vector.load %arg8[%c0_12, %c0_13] : memref<16x256xf32, #tpu.memory_space<vmem>>, vector<16x256xf32>
    %13 = math.sqrt %11 : vector<16x256xf32>
    %14 = arith.mulf %12, %13 : vector<16x256xf32>
    %15 = arith.addf %5, %14 : vector<16x256xf32>
    %c0_14 = arith.constant 0 : index
    %c0_15 = arith.constant 0 : index
    %16 = vector.load %arg9[%c0_14, %c0_15] : memref<16x256xf32, #tpu.memory_space<vmem>>, vector<16x256xf32>
    tpu.vector_store %arg9[%c0_14, %c0_15], %15 {strides = array<i32>} : memref<16x256xf32, #tpu.memory_space<vmem>>, vector<16x256xf32>,
    return
  }
  func.func @transform_0(%arg0: i32, %arg1: i32) -> (i32, i32) {
    %c0_i32 = arith.constant 0 : i32
    %c0_i32_0 = arith.constant 0 : i32
    return %arg1, %c0_i32 : i32, i32
  }
  func.func @transform_1(%arg0: i32, %arg1: i32) -> (i32, i32) {
    %c0_i32 = arith.constant 0 : i32
    %c0_i32_0 = arith.constant 0 : i32
    return %arg1, %c0_i32 : i32, i32
  }
  func.func @transform_2(%arg0: i32, %arg1: i32) -> (i32, i32) {
    %c0_i32 = arith.constant 0 : i32
    %c0_i32_0 = arith.constant 0 : i32
    return %c0_i32, %arg0 : i32, i32
  }
  func.func @transform_3(%arg0: i32, %arg1: i32) -> (i32, i32) {
    %c0_i32 = arith.constant 0 : i32
    %c0_i32_0 = arith.constant 0 : i32
    return %c0_i32, %arg0 : i32, i32
  }
  func.func @transform_4(%arg0: i32, %arg1: i32) -> (i32, i32) {
    %c0_i32 = arith.constant 0 : i32
    %c0_i32_0 = arith.constant 0 : i32
    return %c0_i32, %arg0 : i32, i32
  }
  func.func @transform_5(%arg0: i32, %arg1: i32) -> (i32, i32) {
    %c0_i32 = arith.constant 0 : i32
    %c0_i32_0 = arith.constant 0 : i32
    return %c0_i32, %arg0 : i32, i32
  }
  func.func @transform_6(%arg0: i32, %arg1: i32) -> (i32, i32) {
    %c0_i32 = arith.constant 0 : i32
    return %arg1, %arg0 : i32, i32
  }
  func.func @transform_7(%arg0: i32, %arg1: i32) -> (i32, i32) {
    %c0_i32 = arith.constant 0 : i32
    return %arg1, %arg0 : i32, i32
  }
}

</mosaic_0001>

<bundles_post_ra>
// kernel: tpu_custom_call.1
= control target key start
LH: loop header
LB: loop body
LE: loop exit
PB: predicated region body
PF: predicated region fallthrough
CT: control target
= control target key end

     0   :  { %s1715_s0 = inlined_call_operand.hbm [shape: bf16[16,32], index: 0, kind: input, shape index: {}]   ;;  %s1716_s1 = inlined_call_operand.hbm [shape: bf16[16,32], index: 1, kind: input, shape index: {}]   ;;  %s1717_s2 = inlined_call_operand.hbm [shape: bf16[32,512], index: 2, kind: input, shape index: {}]   ;;  %s1718_s3 = inlined_call_operand.hbm [shape: bf16[32,512], index: 3, kind: input, shape index: {}]   ;;  %s1719_s4 = inlined_call_operand.vmem [shape: f32[1,512], index: 4, kind: input, shape index: {}]   ;;  %s1720_s5 = inlined_call_operand.vmem [shape: f32[1,512], index: 5, kind: input, shape index: {}]   ;;  %s1721_s6 = inlined_call_operand.hbm [shape: f32[16,512], index: 6, kind: input, shape index: {}]   ;;  %s1722_s7 = inlined_call_operand.hbm [shape: f32[16,512], index: 7, kind: output, shape index: {}]  }
   0x1   :  { %1743 = sst [smem:[#allocation19_spill]] %s1715_s0 }
   0x2   :  { %1744 = sst [smem:[#allocation20_spill]] %s1717_s2 }
   0x3   :  { %1745 = sst [smem:[#allocation21_spill]] %s1718_s3 }
   0x4   :  { %1746 = sst [smem:[#allocation22_spill]] %s1719_s4 }
   0x5   :  { %1747 = sst [smem:[#allocation23_spill]] %s1720_s5 }
   0x6   :  { %1748 = sst [smem:[#allocation24_spill]] %s1722_s7 }
   0x7   :  { %12 = vsyncpa [#allocation3], 0 }
   0x8   :  { %13 = vsyncpa [#allocation6], 0 }
   0x9   :  { %14 = vsyncpa [#allocation4], 0 }
   0xa   :  { %16 = vsyncpa [#allocation4 + $0x1], 0  ;;  %s1354_s24 = smov 0   ;;  %s1356_s25 = smov 0  }
   0xb   :  { %s1358_s26 = smov 0   ;;  %s1360_s27 = smov 0  }
   0xc   :  { %s1362_s28 = smov 0   ;;  %s1364_s29 = smov 0  }
   0xd LB: > { %1749 = sst [smem:[#allocation15_spill]] %s1275_s24  ;;  %s1385_s30 = sadd.s32 4294967295, %s1295_s29   ;;  %s1295_s29 = sphi %s1364_s29, %s22_s29   ;;  %s1291_s28 = sphi %s1362_s28, %s1794_s28   ;;  %s1287_s27 = sphi %s1360_s27, %s1793_s27   ;;  %s1283_s26 = sphi %s1358_s26, %s1792_s26   ;;  %s1279_s25 = sphi %s1356_s25, %s1791_s25   ;;  %s1275_s24 = sphi %s1354_s24, %s1790_s24  }
   0xe   : > { %s889_s8 = sadd.s32 4294967294, %s1295_s29   ;;  %p100_p0 = scmp.ne.s32.totalorder %s1283_s26, %s1279_s25 }
   0xf   : > { %p101_p1 = scmp.eq.s32.totalorder %s1295_s29, 0  ;;  %p106_p2 = scmp.ne.s32.totalorder %s1279_s25, %s1275_s24 }
  0x10   : > { %p1723_p3 = scmp.eq.s32.totalorder %s1385_s30, 0  ;;  %p238_p4 = scmp.eq.s32.totalorder %s1385_s30, 1 }
  0x11   : > { %p1396_p5 = por %p101_p1, %p100_p0  ;;  %p244_p6 = scmp.eq.s32.totalorder %s889_s8, 1 }
  0x12   : > { %p1402_p7 = por %p1723_p3, %p106_p2  ;;  %p1406_p8 = por %p238_p4, %p100_p0 }
  0x13   : > { %p1410_p9 = por %p244_p6, %p106_p2  ;;  %p890_p10 = scmp.ge.s32.totalorder %s1295_s29, 1 }
  0x14   : > { %s1751_s11 = scalar_select %p1402_p7, 1, 0 }
  0x15   : > { %s1752_s12 = scalar_select %p1406_p8, 1, 0 }
  0x16   : > { %s1754_s13 = scalar_select %p1410_p9, 1, 0 }
  0x17   : > { %1753 = sst [smem:[#allocation16_spill]] %s1752_s12  ;;  %p251_p11 = scmp.lt.s32.totalorder %s1295_s29, 3 }
  0x18   : > { %1755 = sst [smem:[#allocation17_spill]] %s1754_s13  ;;  %s1297_s15 = smov [#allocation2]  }
  0x19   : > { %p1416_p12 = pnand %p890_p10, %p251_p11  ;;  %s266_s16 = sshll.u32 %s1297_s15, 4  ;;  %s1420_s16 = int_to_ptr.vmem [resolvable:$true] %s266_s16 }
  0x1a   : > { %p972_p1 = scmp.lt.s32.totalorder %s1295_s29, 2  ;;  %s34_s19 = sadd.s32 1, %s1291_s28 }
  0x1b   : > { %s1756_s14 = scalar_select %p1416_p12, 1, 0 }
  0x1c   : > { %p949_p13 = pneg %p1416_p12  ;;  %p1434_p4 = pnand %p972_p1, %p1396_p5 }
  0x1d   : > { %p1439_p6 = scmp.ge.s32.totalorder %s34_s19, 2  ;;  %s1760_s0 = sld [smem:[#allocation19_spill]] }
  0x1e   : > { %p1428_p2 = pnand %p949_p13, %p1723_p3 }
  0x1f   : > { %s1758_s18 = scalar_select %p1434_p4, 1, 0 }
  0x20   : > { %s1757_s17 = scalar_select %p1428_p2, 1, 0 }
  0x21   : > { %p1733_p11 = pneg %p1428_p2 }
  0x23   : > { %s1059_s23 = scalar_lea.hbm %s1760_s0, 128 }
  0x24   : > { %p1060_p10 = scmp.ne.s32.totalorder %s1760_s0, %s1059_s23  ;;  %p1066_p1 = scmp.lt.u32.totalorder %s1059_s23, %s1760_s0 }
  0x26   : > { %p1062_p5 = pnand %p1733_p11, %p1060_p10 }
  0x28   : > { %p1063_p13 = pneg %p1062_p5 }
  0x2a   : > { %p1068_p0 = pnand %p1066_p1, %p1063_p13 }
  0x2c   : > { %1071 = shalt.err (!%p1068_p0)
}
  0x2d   : > { %s1072_s21 = scalar_lea.vmem %s1420_s16, 128  ;;  %p1080_p7 = scmp.lt.s32.totalorder %s1420_s16, %s1420_s16 }
  0x2e   : > { %p1073_p3 = scmp.ne.s32.totalorder %s1420_s16, %s1072_s21  ;;  %p1081_p10 = scmp.lt.s32.totalorder %s1072_s21, %s1072_s21 }
  0x30   : > { %p1075_p9 = pnand %p1073_p3, %p1733_p11  ;;  %p1082_p5 = por %p1081_p10, %p1080_p7 }
  0x32   : > { %p1076_p8 = pneg %p1075_p9 }
  0x34   : > { %p1083_p12 = pnand %p1082_p5, %p1076_p8 }
  0x36   : > { %1086 = shalt.err (!%p1083_p12)
}
  0x37   : > { %s1732_s9 = smov 64   ;;  %s1736_s22 = smov 4  }
  0x38   : > { %952 = dma.hbm_to_vmem [thread:$0]  (!%p1428_p2), %s1760_s0, 128, %s1420_s16, [#allocation3], %s1732_s9, %s1732_s9, %s1736_s22  }
  0x39   : > { %s296_s15 = sand.u32 1, %s1295_s29   ;;  %s1796_s19 = smov (%p1439_p6, %s34_s19), 0 }
  0x3a   : > { %1761 = sst [smem:[#allocation18_spill]] %s1796_s19  ;;  %s298_s10 = sand.u32 1, %s1283_s26  }
  0x3b   : > { %s90_s21 = ssub.s32 %s1291_s28, %s1796_s19  ;;  %s1481_s13 = sshll.u32 %s298_s10, 5 }
  0x3c   : > { %p91_p3 = scmp.eq.s32.totalorder %s90_s21, 0  ;;  %s929_s24 = sshll.u32 %s1291_s28, 7 }
  0x3d   : > { %s300_s7 = scalar_lea.vmem [#allocation7], %s1481_s13  ;;  %s1762_s4 = sadd.s32 1, %s1283_s26 }
  0x3e   : > { %s307_s12 = sshll.u32 %s300_s7, 4  ;;  %s1763_s2 = sld [smem:[#allocation20_spill]]  ;;  %s1497_s12 = int_to_ptr.vmem [resolvable:$true] %s307_s12 }
  0x3f   : > { %s1488_s5 = scalar_select %p91_p3, %s1283_s26, %s1762_s4  }
  0x40   : > { %s1499_s8 = scalar_lea.sflag [#allocation3], %s296_s15  ;;  %p1505_p8 = pneg %p1434_p4 }
  0x42   : > { %s1764_s4 = scalar_select %p1505_p8, 1, 0 }
  0x44   : > { %s1495_s20 = scalar_lea.hbm %s1763_s2, %s929_s24  ;;  %s1092_s16 = scalar_lea.hbm %s1763_s2, 1024 }
  0x45   : > { %s1087_s10 = scalar_lea.hbm %s1495_s20, 512  ;;  %p1093_p0 = scmp.lt.u32.totalorder %s1495_s20, %s1763_s2 }
  0x46   : > { %p1088_p7 = scmp.ne.s32.totalorder %s1495_s20, %s1087_s10  ;;  %p1094_p6 = scmp.lt.u32.totalorder %s1092_s16, %s1087_s10 }
  0x47   : > { %p1096_p1 = scmp.lt.u32.totalorder %s1087_s10, %s1495_s20 }
  0x48   : > { %p1090_p9 = pnand %p1505_p8, %p1088_p7  ;;  %p1095_p13 = por %p1094_p6, %p1093_p0 }
  0x4a   : > { %p1091_p12 = pneg %p1090_p9  ;;  %p1097_p10 = por %p1096_p1, %p1095_p13 }
  0x4c   : > { %p1098_p5 = pnand %p1097_p10, %p1091_p12 }
  0x4e   : > { %1101 = shalt.err (!%p1098_p5)
}
  0x4f   : > { %s1102_s15 = scalar_lea.vmem %s1497_s12, 512  ;;  %s1300_s7 = smov [#allocation7]  }
  0x50   : > { %p1103_p3 = scmp.ne.s32.totalorder %s1497_s12, %s1102_s15  ;;  %s1107_s21 = sshll.u32 %s1300_s7, 4  ;;  %s1108_s21 = int_to_ptr.vmem [resolvable:$false] %s1107_s21 }
  0x51   : > { %s1109_s9 = scalar_lea.vmem %s1108_s21, 1024  ;;  %p1110_p11 = scmp.lt.s32.totalorder %s1497_s12, %s1108_s21 }
  0x52   : > { %p1105_p7 = pnand %p1103_p3, %p1505_p8  ;;  %p1111_p2 = scmp.lt.s32.totalorder %s1109_s9, %s1102_s15 }
  0x54   : > { %p1106_p9 = pneg %p1105_p7  ;;  %p1112_p0 = por %p1111_p2, %p1110_p11 }
  0x56   : > { %p1113_p6 = pnand %p1112_p0, %p1106_p9 }
  0x58   : > { %1116 = shalt.err (!%p1113_p6)
}
  0x59   : > { %s1737_s10 = smov 256   ;;  %s1302_s16 = smov 128  }
  0x5a   : > { %s1303_s23 = smov 8   ;;  %s1765_s3 = sld [smem:[#allocation21_spill]] }
  0x5b   : > { %959 = dma.hbm_to_vmem [thread:$0]  (!%p1434_p4), %s1495_s20, 512, %s1497_s12, %s1499_s8, %s1737_s10, %s1302_s16, %s1303_s23  }
  0x5c   : > { %s321_s9 = scalar_lea.vmem [#allocation8], %s1481_s13 }
  0x5d   : > { %s328_s22 = sshll.u32 %s321_s9, 4  ;;  %s1540_s22 = int_to_ptr.vmem [resolvable:$true] %s328_s22 }
  0x60   : > { %s1537_s21 = scalar_lea.hbm %s1765_s3, %s929_s24  ;;  %s1122_s10 = scalar_lea.hbm %s1765_s3, 1024 }
  0x61   : > { %s1117_s0 = scalar_lea.hbm %s1537_s21, 512  ;;  %p1123_p13 = scmp.lt.u32.totalorder %s1537_s21, %s1765_s3 }
  0x62   : > { %p1118_p2 = scmp.ne.s32.totalorder %s1537_s21, %s1117_s0  ;;  %p1124_p1 = scmp.lt.u32.totalorder %s1122_s10, %s1117_s0 }
  0x63   : > { %p1126_p5 = scmp.lt.u32.totalorder %s1117_s0, %s1537_s21 }
  0x64   : > { %p1120_p11 = pnand %p1118_p2, %p1505_p8  ;;  %p1125_p10 = por %p1124_p1, %p1123_p13 }
  0x66   : > { %p1121_p12 = pneg %p1120_p11  ;;  %p1127_p3 = por %p1126_p5, %p1125_p10 }
  0x68   : > { %p1128_p7 = pnand %p1127_p3, %p1121_p12 }
  0x6a   : > { %1131 = shalt.err (!%p1128_p7)
}
  0x6b   : > { %s1132_s7 = scalar_lea.vmem %s1540_s22, 512  ;;  %s1304_s9 = smov [#allocation8]  }
  0x6c   : > { %p1133_p9 = scmp.ne.s32.totalorder %s1540_s22, %s1132_s7  ;;  %s1137_s12 = sshll.u32 %s1304_s9, 4  ;;  %s1138_s12 = int_to_ptr.vmem [resolvable:$false] %s1137_s12 }
  0x6d   : > { %s1139_s20 = scalar_lea.vmem %s1138_s12, 1024  ;;  %p1140_p2 = scmp.lt.s32.totalorder %s1540_s22, %s1138_s12 }
  0x6e   : > { %p1135_p0 = pnand %p1133_p9, %p1505_p8  ;;  %p1141_p11 = scmp.lt.s32.totalorder %s1139_s20, %s1132_s7 }
  0x70   : > { %p1136_p6 = pneg %p1135_p0  ;;  %p1142_p13 = por %p1141_p11, %p1140_p2 }
  0x72   : > { %p1143_p1 = pnand %p1142_p13, %p1136_p6 }
  0x74   : > { %1146 = shalt.err (!%p1143_p1)
}
  0x75   : > { %s1766_s0 = smov 256   ;;  %s1305_s10 = smov [#allocation5]  }
  0x76   : > { %962 = dma.hbm_to_vmem [thread:$0]  (!%p1434_p4), %s1537_s21, 512, %s1540_s22, %s1499_s8, %s1766_s0, %s1302_s16, %s1303_s23  }
  0x77   : > { %s282_s15 = sshll.u32 %s1305_s10, 4  ;;  %s931_s24 = sshll.u32 %s1291_s28, 8  ;;  %s283_s15 = int_to_ptr.vmem [resolvable:$true] %s282_s15 }
  0x78   : > { %s1147_s12 = scalar_lea.hbm %s1716_s1, 128  ;;  %p1767_p10 = scmp.ne.s32.totalorder %s1757_s17, 0 }
  0x79   : > { %p1148_p12 = scmp.ne.s32.totalorder %s1716_s1, %s1147_s12  ;;  %p1154_p9 = scmp.lt.u32.totalorder %s1147_s12, %s1716_s1 }
  0x7a   : > { %p1768_p5 = pneg %p1767_p10 }
  0x7c   : > { %p1150_p3 = pnand %p1148_p12, %p1768_p5 }
  0x7e   : > { %p1151_p7 = pneg %p1150_p3 }
  0x80   : > { %p1156_p0 = pnand %p1154_p9, %p1151_p7 }
  0x82   : > { %1159 = shalt.err (!%p1156_p0)
}
  0x83   : > { %s1160_s22 = scalar_lea.vmem %s283_s15, 128  ;;  %p1769_p2 = pmov %p1768_p5 }
  0x84   : > { %p1161_p6 = scmp.ne.s32.totalorder %s283_s15, %s1160_s22  ;;  %p1168_p1 = scmp.lt.s32.totalorder %s283_s15, %s283_s15 }
  0x85   : > { %p1169_p4 = scmp.lt.s32.totalorder %s1160_s22, %s1160_s22 }
  0x86   : > { %p1163_p11 = pnand %p1161_p6, %p1769_p2 }
  0x87   : > { %p1170_p8 = por %p1169_p4, %p1168_p1 }
  0x88   : > { %p1164_p13 = pneg %p1163_p11 }
  0x8a   : > { %p1171_p5 = pnand %p1170_p8, %p1164_p13 }
  0x8c   : > { %1174 = shalt.err (!%p1171_p5)
}
  0x8d   : > { %s1770_s2 = smov 4   ;;  %s1771_s16 = smov 64  }
  0x8e   : > { %955 = dma.hbm_to_vmem [thread:$0]  (!%p1767_p10), %s1716_s1, 128, %s283_s15, [#allocation6], %s1771_s16, %s1771_s16, %s1770_s2  }
  0x8f   : > { %s1594_s10 = scalar_lea.hbm %s1721_s6, %s931_s24  ;;  %s358_s9 = scalar_lea.vmem [#allocation9], %s1481_s13 }
  0x90   : > { %s368_s17 = sshll.u32 %s358_s9, 4  ;;  %s1175_s7 = scalar_lea.hbm %s1594_s10, 512  ;;  %s1597_s17 = int_to_ptr.vmem [resolvable:$true] %s368_s17 }
  0x91   : > { %p1176_p4 = scmp.ne.s32.totalorder %s1594_s10, %s1175_s7  ;;  %p1772_p8 = scmp.ne.s32.totalorder %s1764_s4, 0 }
  0x92   : > { %s1180_s20 = scalar_lea.hbm %s1721_s6, 1024  ;;  %p1181_p10 = scmp.lt.u32.totalorder %s1594_s10, %s1721_s6 }
  0x93   : > { %p1178_p12 = pnand %p1176_p4, %p1772_p8  ;;  %p1182_p7 = scmp.lt.u32.totalorder %s1180_s20, %s1175_s7 }
  0x94   : > { %p1184_p0 = scmp.lt.u32.totalorder %s1175_s7, %s1594_s10 }
  0x95   : > { %p1179_p3 = pneg %p1178_p12  ;;  %p1183_p9 = por %p1182_p7, %p1181_p10 }
  0x97   : > { %p1185_p6 = por %p1184_p0, %p1183_p9 }
  0x99   : > { %p1186_p2 = pnand %p1185_p6, %p1179_p3 }
  0x9b   : > { %1189 = shalt.err (!%p1186_p2)
}
  0x9c   : > { %s1190_s13 = scalar_lea.vmem %s1597_s17, 512  ;;  %s1306_s2 = smov [#allocation9]  }
  0x9d   : > { %p1191_p11 = scmp.ne.s32.totalorder %s1597_s17, %s1190_s13  ;;  %s1195_s16 = sshll.u32 %s1306_s2, 4  ;;  %s1196_s16 = int_to_ptr.vmem [resolvable:$false] %s1195_s16 }
  0x9e   : > { %s1197_s3 = scalar_lea.vmem %s1196_s16, 1024  ;;  %p1198_p5 = scmp.lt.s32.totalorder %s1597_s17, %s1196_s16 }
  0x9f   : > { %p1193_p13 = pnand %p1191_p11, %p1772_p8  ;;  %p1199_p4 = scmp.lt.s32.totalorder %s1197_s3, %s1190_s13 }
  0xa1   : > { %p1194_p1 = pneg %p1193_p13  ;;  %p1200_p12 = por %p1199_p4, %p1198_p5 }
  0xa3   : > { %p1201_p10 = pnand %p1200_p12, %p1194_p1 }
  0xa5   : > { %1204 = shalt.err (!%p1201_p10)
}
  0xa6   : > { %s1307_s19 = smov 512   ;;  %s1308_s23 = smov 16  }
  0xa7   : > { %p1773_p3 = scmp.ne.s32.totalorder %s1758_s18, 0  ;;  %p1774_p8 = scmp.ne.s32.totalorder %s1756_s14, 0 }
  0xa8   : > { %p1775_p7 = scmp.eq.s32.totalorder (!%p1774_p8), %s1385_s30, 0 }
  0xa9   : > { %965 = dma.hbm_to_vmem [thread:$0]  (!%p1773_p3), %s1594_s10, 512, %s1597_s17, %s1499_s8, %s1307_s19, %s1766_s0, %s1308_s23  }
  0xaa   : > { %380 = sbr.rel (%p1774_p8) target bundleno = 448 (0x1c0), region = 48 }
  0xb1   : > { %1258 = dma.done.wait (%p1775_p7), [#allocation3], 128   ;;  %p1776_p9 = pmov %p1775_p7 }
  0xb2   : > { %p1777_p0 = pmov %p1775_p7 }
  0xb3   : > { %1260 = vsyncadd (%p1776_p9), [#allocation3], 4294967168 }
  0xb4   : > { %1262 = dma.done.wait (%p1777_p0), [#allocation6], 128   ;;  %p1778_p6 = pmov %p1777_p0 }
  0xb5   : > { %s390_s18 = sand.u32 1, %s1385_s30   ;;  %s392_s8 = sand.u32 1, %s1279_s25  }
  0xb6   : > { %1264 = vsyncadd (%p1778_p6), [#allocation6], 4294967168  ;;  %s1636_s14 = sshll.u32 %s392_s8, 5  ;;  %s391_s4 = scalar_lea.sflag [#allocation3], %s390_s18 }
  0xb7   : > { %s394_s0 = scalar_lea.vmem [#allocation7], %s1636_s14  ;;  %p1779_p2 = scmp.ne.s32.totalorder %s1751_s11, 0 }
  0xb9   : > { %1266 = dma.done.wait (%p1779_p2), %s391_s4, 1536  }
  0xba   : > { %1268 = vsyncadd (%p1779_p2), %s391_s4, 4294965760  ;;  %v1309_v0 = vmov 0   ;;  %s403_s21 = scalar_lea.vmem [#allocation8], %s1636_s14  ;;  %v1044_v5 = vld [vmem:[%s394_s0 + $0x4] ss:$8 sps:$4 sm:$0xff]   ;;  %v1043_v8 = vld [vmem:[#allocation5] sm:$0xff]   ;;  %v488_v11 = vlaneseq }
  0xbb   : > { %648 = vmatprep.mubr.bf16.mxu1 %v1309_v0  ;;  %559 = vmatprep.mubr.bf16.mxu0 %v1309_v0  ;;  %v1037_v1 = vld [vmem:[%s403_s21 + $0x4] ss:$8 sps:$4 sm:$0xff]   ;;  %v1039_v2 = vld [vmem:[%s403_s21] ss:$8 sps:$4 sm:$0xff]   ;;  %v1040_v3 = vld [vmem:[%s403_s21 + $0x14] ss:$8 sps:$4 sm:$0xff]  }
  0xbc   : > { %616 = vmatprep.subr.bf16.mxu1 %v1037_v1  ;;  %v1042_v4 = vld [vmem:[%s403_s21 + $0x10] ss:$8 sps:$4 sm:$0xff]   ;;  %v1046_v6 = vld [vmem:[%s394_s0] ss:$8 sps:$4 sm:$0xff]   ;;  %v1047_v7 = vld [vmem:[%s394_s0 + $0x14] ss:$8 sps:$4 sm:$0xff]   ;;  %527 = vmatprep.subr.bf16.mxu0 %v1044_v5 }
  0xbd   : > { %617 = vmatpush1.bf16.msra.mxu1 %v1039_v2  ;;  %vm523_vm0 = vcmask 261120   ;;  %528 = vmatpush1.bf16.msra.mxu0 %v1046_v6  ;;  %v1049_v9 = vld [vmem:[%s394_s0 + $0x10] ss:$8 sps:$4 sm:$0xff]   ;;  %s910_s30 = sshll.u32 %s1287_s27, 1  ;;  %v489_v12 = vshrl.u32 %v488_v11, 7  ;;  %s1780_s9 = sld [smem:[#allocation23_spill]] }
  0xbe   : > { %618 = vmatprep.subr.bf16.mxu1 %v1040_v3  ;;  %529 = vmatprep.subr.bf16.mxu0 %v1047_v7  ;;  %v1050_v10 = vld [vmem:[#allocation2] sm:$0xff]   ;;  %p466_p11 = scmp.lt.s32.totalorder %s910_s30, 3  ;;  %s1781_s15 = sld [smem:[#allocation22_spill]] }
  0xbf   : > { %v490_v13 = vsub.s32 0, %v489_v12  ;;  %v494_v15 = vsub.s32 1, %v489_v12  ;;  %s412_s22 = scalar_lea.vmem [#allocation9], %s1636_s14  ;;  %s460_s24 = scalar_lea.vmem [#allocation10], %s1636_s14 }
  0xc0   : > { %s1798_s30 = smov (!%p466_p11, %s910_s30), 3  ;;  %v659_v39 = vld [vmem:[%s412_s22] sm:$0xff]  ;;  %v660_v45 = vld [vmem:[%s412_s22 + $0x8] sm:$0xff]  ;;  %v661_v50 = vld [vmem:[%s412_s22 + $0x10] sm:$0xff]  ;;  %s720_s13 = sshll.u32 %s460_s24, 4  ;;  %s1659_s13 = int_to_ptr.vmem [resolvable:$true] %s720_s13 }
  0xc1   : > { %619 = vmatpush1.bf16.msra.mxu1 %v1042_v4  ;;  %530 = vmatpush1.bf16.msra.mxu0 %v1049_v9  ;;  %v662_v55 = vld [vmem:[%s412_s22 + $0x18] sm:$0xff]  ;;  %s932_s2 = sshll.u32 %s1287_s27, 8  ;;  %s1782_s16 = sld [smem:[#allocation16_spill]] }
  0xc2   : > { %s1783_s23 = sld [smem:[#allocation24_spill]]  ;;  %s1668_s18 = scalar_lea.sflag [#allocation4], %s392_s8 }
  0xc3   : > { %s473_s17 = scalar_lea.vmem %s1780_s9, %s1798_s30  ;;  %s1205_s14 = scalar_lea.vmem %s1659_s13, 512 }
  0xc4   : > { %923 = vmatmul.mubr.msk.bf16.vlgmr.msra.gmra.mrb[0].mxu1 %vm523_vm0, %v1043_v8  ;;  %917 = vmatmul.mubr.msk.bf16.vlgmr.msra.gmra.mrb[0].mxu0 %vm523_vm0, %v1050_v10  ;;  %v576_v14 = vld [vmem:[%s473_s17] sm:$0x3]  ;;  %s468_s20 = scalar_lea.vmem %s1781_s15, %s1798_s30  ;;  %p1206_p13 = scmp.ne.s32.totalorder %s1659_s13, %s1205_s14 }
  0xc5   : > { %v581_v16 = vrot.slane %v576_v14, %v490_v13  ;;  %v585_v17 = vrot.slane %v576_v14, %v494_v15  ;;  %v486_v29 = vld [vmem:[%s468_s20] sm:$0x3]  ;;  %s1310_s4 = smov [#allocation10]  }
  0xc6   : > { %v491_v31 = vrot.slane %v486_v29, %v490_v13  ;;  %v495_v32 = vrot.slane %v486_v29, %v494_v15  ;;  %s1209_s0 = sshll.u32 %s1310_s4, 4  ;;  %s1210_s0 = int_to_ptr.vmem [resolvable:$false] %s1209_s0 }
  0xc7   : > { %p1784_p1 = scmp.ne.s32.totalorder %s1782_s16, 0  ;;  %s1211_s21 = scalar_lea.vmem %s1210_s0, 1024 }
  0xc8   : > { %s1664_s27 = scalar_lea.hbm %s1783_s23, %s932_s2  ;;  %p1212_p12 = scmp.lt.s32.totalorder %s1659_s13, %s1210_s0 }
  0xc9   : > { %p1207_p5 = pnand %p1206_p13, %p1784_p1  ;;  %p1213_p10 = scmp.lt.s32.totalorder %s1211_s21, %s1205_s14 }
  0xcb   : > { %p1208_p4 = pneg %p1207_p5  ;;  %p1214_p3 = por %p1213_p10, %p1212_p12 }
  0xcd   : > { %p1215_p8 = pnand %p1214_p3, %p1208_p4 }
 0x197   : > { %v650_v18 = vpop.f32.mrb[0].mxu1  ;;  %v561_v26 = vpop.f32.mrb[0].mxu0 }
 0x198   : > { %v651_v19 = vadd.f32 %v650_v18, %v581_v16  ;;  %v652_v20 = vpop.f32.mrb[1].mxu1  ;;  %v563_v27 = vpop.f32.mrb[1].mxu0  ;;  %v562_v36 = vadd.f32 %v561_v26, %v491_v31 }
 0x199   : > { %v653_v21 = vadd.f32 %v652_v20, %v585_v17  ;;  %v654_v22 = vpop.f32.mrb[2].mxu1  ;;  %v565_v28 = vpop.f32.mrb[2].mxu0  ;;  %v564_v40 = vadd.f32 %v563_v27, %v495_v32 }
 0x19a   : > { %1051 = vrsqrt.f32 %v651_v19  ;;  %v655_v23 = vadd.f32 %v654_v22, %v581_v16  ;;  %v656_v24 = vpop.f32.mrb[3].mxu1  ;;  %v567_v30 = vpop.f32.mrb[3].mxu0  ;;  %vm665_vm1 = vcmp.eq.f32.partialorder %v651_v19, inf  ;;  %vm667_vm2 = vcmp.eq.f32.partialorder %v651_v19, 0.0 }
 0x19b   : > { %1053 = vrsqrt.f32 %v653_v21  ;;  %v657_v25 = vadd.f32 %v656_v24, %v585_v17  ;;  %v668_v34 = vand.u32 2147483648, %v651_v19  ;;  %vm672_vm3 = vcmp.eq.f32.partialorder %v653_v21, inf }
 0x19c   : > { %1055 = vrsqrt.f32 %v655_v23  ;;  %vm674_vm4 = vcmp.eq.f32.partialorder %v653_v21, 0.0  ;;  %v675_v42 = vand.u32 2147483648, %v653_v21  ;;  %vm679_vm5 = vcmp.eq.f32.partialorder %v655_v23, inf }
 0x19d   : > { %1057 = vrsqrt.f32 %v657_v25  ;;  %vm681_vm6 = vcmp.eq.f32.partialorder %v655_v23, 0.0  ;;  %v682_v47 = vand.u32 2147483648, %v655_v23  ;;  %vm686_vm7 = vcmp.eq.f32.partialorder %v657_v25, inf }
 0x19e   : > { %v689_v56 = vand.u32 2147483648, %v657_v25  ;;  %vm688_vm8 = vcmp.eq.f32.partialorder %v657_v25, 0.0  ;;  %v566_v61 = vadd.f32 %v565_v28, %v491_v31  ;;  %v568_v1 = vadd.f32 %v567_v30, %v495_v32 }
 0x1a4   : > { %v1052_v33 = vpop.eup %1051 }
 0x1a5   : > { %v1054_v35 = vpop.eup %1053  ;;  %v664_v37 = vmul.f32 %v1052_v33, %v651_v19 }
 0x1a6   : > { %v1056_v38 = vpop.eup %1055  ;;  %v671_v41 = vmul.f32 %v1054_v35, %v653_v21 }
 0x1a7   : > { %v1058_v43 = vpop.eup %1057  ;;  %v666_v44 = vsel %vm665_vm1, %v651_v19, %v664_v37  ;;  %v678_v46 = vmul.f32 %v1056_v38, %v655_v23 }
 0x1a8   : > { %v669_v48 = vsel %vm667_vm2, %v668_v34, %v666_v44  ;;  %v673_v49 = vsel %vm672_vm3, %v653_v21, %v671_v41  ;;  %v685_v51 = vmul.f32 %v1058_v43, %v657_v25 }
 0x1a9   : > { %v691_v52 = vmul.f32 %v669_v48, %v659_v39  ;;  %v676_v53 = vsel %vm674_vm4, %v675_v42, %v673_v49  ;;  %v680_v54 = vsel %vm679_vm5, %v655_v23, %v678_v46 }
 0x1aa   : > { %v692_v57 = vmul.f32 %v676_v53, %v660_v45  ;;  %v683_v58 = vsel %vm681_vm6, %v682_v47, %v680_v54  ;;  %v687_v59 = vsel %vm686_vm7, %v657_v25, %v685_v51 }
 0x1ab   : > { %v695_v60 = vadd.f32 %v691_v52, %v562_v36  ;;  %v693_v62 = vmul.f32 %v683_v58, %v661_v50  ;;  %v690_v63 = vsel %vm688_vm8, %v689_v56, %v687_v59 }
 0x1ac   : > { %v696_v0 = vadd.f32 %v692_v57, %v564_v40  ;;  %v694_v2 = vmul.f32 %v690_v63, %v662_v55 }
 0x1ad   : > { %699 = vst [vmem:[%s460_s24] sm:$0xff] %v695_v60  ;;  %v697_v3 = vadd.f32 %v693_v62, %v566_v61 }
 0x1ae   : > { %700 = vst [vmem:[%s460_s24 + $0x8] sm:$0xff] %v696_v0  ;;  %v698_v4 = vadd.f32 %v694_v2, %v568_v1 }
 0x1af   : > { %701 = vst [vmem:[%s460_s24 + $0x10] sm:$0xff] %v697_v3 }
 0x1b0   : > { %702 = vst [vmem:[%s460_s24 + $0x18] sm:$0xff] %v698_v4 }
 0x1b1   : > { %1218 = shalt.err (!%p1215_p8)
}
 0x1b2   : > { %s1219_s8 = scalar_lea.hbm %s1664_s27, 512  ;;  %s1223_s10 = scalar_lea.hbm %s1783_s23, 1024 }
 0x1b3   : > { %p1220_p7 = scmp.ne.s32.totalorder %s1664_s27, %s1219_s8  ;;  %p1224_p6 = scmp.lt.u32.totalorder %s1664_s27, %s1783_s23 }
 0x1b4   : > { %p1225_p2 = scmp.lt.u32.totalorder %s1223_s10, %s1219_s8  ;;  %p1227_p13 = scmp.lt.u32.totalorder %s1219_s8, %s1664_s27 }
 0x1b5   : > { %p1221_p9 = pnand %p1220_p7, %p1784_p1 }
 0x1b6   : > { %p1226_p11 = por %p1225_p2, %p1224_p6 }
 0x1b7   : > { %p1222_p0 = pneg %p1221_p9 }
 0x1b8   : > { %p1228_p5 = por %p1227_p13, %p1226_p11 }
 0x1ba   : > { %p1229_p4 = pnand %p1228_p5, %p1222_p0 }
 0x1bc   : > { %1232 = shalt.err (!%p1229_p4)
}
 0x1bd   : > { %s1311_s7 = smov 256   ;;  %s1312_s12 = smov 512  }
 0x1be   : > { %s1313_s15 = smov 16  }
 0x1bf   : > { %947 = dma.vmem_to_hbm [thread:$0]  (%p1784_p1), %s1659_s13, 512, %s1664_s27, %s1668_s18, %s1311_s7, %s1312_s12, %s1313_s15  }
 0x1c0 PF: > { %s1785_s20 = sld [smem:[#allocation15_spill]]  ;;  %s1786_s22 = sld [smem:[#allocation17_spill]] }
 0x1c1   : > { %p1788_p10 = scmp.ge.s32.totalorder %s1295_s29, 2 }
 0x1c6   : > { %s735_s24 = sand.u32 1, %s1785_s20   ;;  %p1787_p12 = scmp.ne.s32.totalorder %s1786_s22, 0 }
 0x1c7   : > { %s736_s2 = scalar_lea.sflag [#allocation4], %s735_s24 }
 0x1c8   : > { %p967_p3 = pnand %p1788_p10, %p1787_p12 }
 0x1ca   : > { %1270 = dma.done.wait (!%p967_p3), %s736_s2, 512  }
 0x1cb   : > { %1272 = vsyncadd (!%p967_p3), %s736_s2, 4294966784  ;;  %s22_s29 = sadd.s32 1, %s1295_s29   ;;  %s1789_s16 = sld [smem:[#allocation18_spill]] }
 0x1cc   : > { %p19_p8 = scmp.ge.s32.totalorder %s22_s29, 4   ;;  %s1790_s24 = smov %s1279_s25 }
 0x1cd   : > { %s1791_s25 = smov %s1283_s26  ;;  %s1792_s26 = smov %s1488_s5 }
 0x1ce   : > { %s1793_s27 = smov %s1291_s28  ;;  %21 = sbr.rel (!%p19_p8) target bundleno = 13 (0xd), region = 130 }
 0x1d1   : > { %s1794_s28 = smov %s1789_s16 }
 0x1d5   :  { %741 = vsyncpa [#allocation3], 1 }
 0x1d6   :  { %743 = vsyncpa [#allocation3 + $0x1], 1 }
 0x1d7   :  { %744 = vsyncpa [#allocation6], 1 }
 0x1d8   :  { %745 = vsyncpa [#allocation4], 1 }
 0x1d9   :  { %747 = vsyncpa [#allocation4 + $0x1], 1 }

</bundles_post_ra>
